<compile_context>
chip_gen: v6e
topology: v6e:2x2x1
jax: 0.10.0
libtpu: 0.0.40
codegen_flags: <defaults>
</compile_context>

<pallas_src>
import jax
import jax.numpy as jnp
from jax.experimental import pallas as pl
from jax.experimental.pallas import tpu as pltpu


# ----------------------------------------------------------------------------
# helpers
# ----------------------------------------------------------------------------
def _round_up(x, m):
    return ((x + m - 1) // m) * m


def _pick_tile(n, cap, align):
    """Largest divisor of n that is <= cap and a multiple of `align`, else n."""
    if n <= cap:
        return n
    t = (cap // align) * align
    while t >= align:
        if n % t == 0:
            return t
        t -= align
    return n


def _vmem_capacity_bytes():
    try:
        return int(pltpu.get_tpu_info().vmem_capacity_bytes)
    except Exception:
        return 64 * 1024 * 1024   # conservative (v7x-sized) fallback


# ----------------------------------------------------------------------------
# Kernel 1: tiled linear  y = x @ W_t + b   (W_t pre-transposed: (K, E_out))
#   * bf16 MXU operands, f32 accumulate + bias, configurable output dtype
# ----------------------------------------------------------------------------
def _linear_kernel(x_ref, wt_ref, b_ref, o_ref):
    x = x_ref[...].astype(jnp.bfloat16)
    acc = jnp.dot(x, wt_ref[...], preferred_element_type=jnp.float32) + b_ref[...]
    o_ref[...] = acc.astype(o_ref.dtype)


def pallas_linear(x, w_t, b, out_dtype=jnp.bfloat16, vmem_limit=48 * 1024 * 1024):
    """x: (N, K), w_t: (K, E_out), b: (E_out,) -> (N, E_out) in out_dtype."""
    n, kdim = x.shape
    e_out = w_t.shape[1]
    tm = min(512, _round_up(n, 16))        # bf16-sublane-friendly row tile
    n_pad = _round_up(n, tm)
    if n_pad != n:                          # pad rows instead of one huge block
        x = jnp.pad(x, ((0, n_pad - n), (0, 0)))
    tn = _pick_tile(e_out, 512, 128)        # lane-dense output columns
    grid = (n_pad // tm, e_out // tn)

    out = pl.pallas_call(
        _linear_kernel,
        out_shape=jax.ShapeDtypeStruct((n_pad, e_out), out_dtype),
        grid_spec=pltpu.PrefetchScalarGridSpec(
            num_scalar_prefetch=0,
            grid=grid,
            in_specs=[
                pl.BlockSpec((tm, kdim), lambda i, j: (i, 0)),
                pl.BlockSpec((kdim, tn), lambda i, j: (0, j)),
                pl.BlockSpec((1, tn), lambda i, j: (0, j)),
            ],
            out_specs=pl.BlockSpec((tm, tn), lambda i, j: (i, j)),
        ),
        compiler_params=pltpu.CompilerParams(
            dimension_semantics=("parallel", "parallel"),
            vmem_limit_bytes=vmem_limit,
        ),
    )(x, w_t.astype(jnp.bfloat16), b.reshape(1, e_out).astype(jnp.float32))
    return out[:n] if n_pad != n else out


# ----------------------------------------------------------------------------
# Kernel 2: global/local attention.
#   grid = (batch b, head-group g, tgt tile t); all axes independent.
#   Inputs arrive pre-stacked as bf16:
#     q_stack: (4, B, H, tgt, hd)  chunks [q, q_left, q_right, q_local] (q, q_local pre-scaled)
#     k_stack: (4, B, H, src, hd)  chunks [k, k_left, k_right, k_local]
#     v:       (B, H, src, hd)
#     tri:     (src, 2*src)        [triu | triu^T] fused operand
# ----------------------------------------------------------------------------
def _attention_kernel(tri_ref, qs_ref, ks_ref, v_ref, attn_ref, cmask_ref):
    f32 = jnp.float32
    bf16 = jnp.bfloat16
    Hg = v_ref.shape[1]
    tq = qs_ref.shape[3]
    src = ks_ref.shape[3]

    q = qs_ref[0, 0]          # (Hg, tq, hd) bf16, pre-scaled
    q_left = qs_ref[1, 0]
    q_right = qs_ref[2, 0]
    q_local = qs_ref[3, 0]    # pre-scaled
    k = ks_ref[0, 0]          # (Hg, src, hd)
    k_left = ks_ref[1, 0]
    k_right = ks_ref[2, 0]
    k_local = ks_ref[3, 0]
    v = v_ref[0]              # (Hg, src, hd)
    tri = tri_ref[...]        # (src, 2*src) = [triu | triu^T]

    # per-head q @ k^T, contracting the LAST dim of both operands (no relayout)
    def qk(a, b):
        return jax.lax.dot_general(
            a, b, (((2,), (2,)), ((0,), (0,))),
            preferred_element_type=f32)                 # (Hg, tq, src)

    # manual softmax: divide goes to the EUP via approx reciprocal
    def softmax(x):
        m = jnp.max(x, axis=-1, keepdims=True)
        e = jnp.exp(x - m)
        return e * pl.reciprocal(jnp.sum(e, axis=-1, keepdims=True), approx=True)

    global_w = qk(q, k)
    local_w = qk(q_local, k_local)
    left_sm = softmax(qk(q_left, k_left)).astype(bf16)    # cast once
    right_sm = softmax(qk(q_right, k_right)).astype(bf16)

    # compute_lrmask2localmask with the fused [triu | triu^T] operand:
    # one (Hg*tq, src) x (src, 2*src) matmul per softmax LHS (2 instead of 4).
    lm = jnp.dot(left_sm.reshape(Hg * tq, src), tri, preferred_element_type=f32)
    rm = jnp.dot(right_sm.reshape(Hg * tq, src), tri, preferred_element_type=f32)
    local_mask = (lm[:, :src] * rm[:, src:] +
                  lm[:, src:] * rm[:, :src]).reshape(Hg, tq, src)   # f32

    attn_w = softmax(0.1 * global_w + local_w * local_mask).astype(bf16)
    # TODO(synk): F.dropout(p=0.0) is the identity; dropout > 0 would need
    # in-kernel PRNG (pltpu.prng_seed / prng_random_bits) and is not implemented.

    attn = jax.lax.dot_general(
        attn_w, v, (((2,), (1,)), ((0,), (0,))),
        preferred_element_type=f32)                       # (Hg, tq, hd)

    attn_ref[0] = attn.astype(attn_ref.dtype)             # bf16 store, no concat
    cmask_ref[0, 0] = jnp.sum(local_mask, axis=0)          # per-(b, g) partial


def _attn_vmem_bytes(hg, tq, src, hd):
    bf, f4 = 2, 4
    io_blocks = (2 * 4 * hg * tq * hd * bf     # q-stack (double buffered)
                 + 4 * hg * src * hd * bf      # k-stack (single buffered)
                 + hg * src * hd * bf          # v
                 + src * 2 * src * bf          # fused triu
                 + 2 * hg * tq * hd * bf       # attn out
                 + 2 * tq * src * f4)          # cmask out
    live = hg * tq * src * (5 * f4 + 2 * bf) + 2 * hg * tq * 2 * src * f4
    return io_blocks + live


def _choose_attn_tiling(tgt, num_heads, src, hd, budget, tq_cap):
    tq = min(tq_cap, _round_up(tgt, 8))
    divisors = [d for d in range(num_heads, 0, -1) if num_heads % d == 0]
    while True:
        for hg in divisors:
            if _attn_vmem_bytes(hg, tq, src, hd) <= budget:
                return tq, hg
        if tq <= 8:
            return 8, 1
        tq = max(8, (tq // 2) // 8 * 8)


def _build_attention_call(bsz, H, Hg, tgt_pad, src, hd, tq, vmem_limit,
                          single_buffer):
    n_hg = H // Hg
    n_tq = tgt_pad // tq

    def inv_spec(shape, idx):
        # grid-invariant-ish blocks: single-buffer to halve their VMEM footprint
        if single_buffer:
            return pl.BlockSpec(shape, idx, pipeline_mode=pl.Buffered(1))
        return pl.BlockSpec(shape, idx)

    tri_spec = inv_spec((src, 2 * src), lambda b, g, t: (0, 0))
    qs_spec = pl.BlockSpec((4, 1, Hg, tq, hd), lambda b, g, t: (0, b, g, t, 0))
    ks_spec = inv_spec((4, 1, Hg, src, hd), lambda b, g, t: (0, b, g, 0, 0))
    v_spec = inv_spec((1, Hg, src, hd), lambda b, g, t: (b, g, 0, 0))

    out_specs = [
        pl.BlockSpec((1, Hg, tq, hd), lambda b, g, t: (b, g, t, 0)),
        pl.BlockSpec((1, 1, tq, src), lambda b, g, t: (b, g, t, 0)),
    ]
    out_shape = (
        jax.ShapeDtypeStruct((bsz, H, tgt_pad, hd), jnp.bfloat16),
        jax.ShapeDtypeStruct((bsz, n_hg, tgt_pad, src), jnp.float32),
    )
    return pl.pallas_call(
        _attention_kernel,
        out_shape=out_shape,
        grid_spec=pltpu.PrefetchScalarGridSpec(
            num_scalar_prefetch=0,
            grid=(bsz, n_hg, n_tq),
            in_specs=[tri_spec, qs_spec, ks_spec, v_spec],
            out_specs=out_specs,
        ),
        compiler_params=pltpu.CompilerParams(
            dimension_semantics=("parallel", "parallel", "parallel"),
            vmem_limit_bytes=vmem_limit,
        ),
    )


# ----------------------------------------------------------------------------
# Module wrapper (parameter setup + minimal glue in plain JAX)
# ----------------------------------------------------------------------------
NUM_WEIGHTS = 9
_Q_CHUNKS = (0, 3, 5, 7)   # q, q_left, q_right, q_local
_K_CHUNKS = (1, 4, 6, 8)   # k, k_left, k_right, k_local
_V_CHUNKS = (2,)           # v


def xavier_uniform(key, shape):
    fan_out, fan_in = shape
    bound = (6.0 / (fan_in + fan_out)) ** 0.5
    return jax.random.uniform(key, shape, jnp.float32, -bound, bound)


def init_params(key, embed_dim):
    k1, k2 = jax.random.split(key)
    return {
        "in_proj_weight": xavier_uniform(k1, (NUM_WEIGHTS * embed_dim, embed_dim)),
        "in_proj_bias": jnp.zeros((NUM_WEIGHTS * embed_dim,), jnp.float32),
        "out_proj_weight": xavier_uniform(k2, (embed_dim, embed_dim)),
        "out_proj_bias": jnp.zeros((embed_dim,), jnp.float32),
    }


def _gather_chunks(w, b, chunks, embed_dim, scales):
    """Gather needed E-wide rows of in_proj, fold per-chunk scaling into W and b,
    and pre-transpose to (E, n*E)."""
    w_parts, b_parts = [], []
    for c, s in zip(chunks, scales):
        ws = w[c * embed_dim:(c + 1) * embed_dim, :]
        bs = b[c * embed_dim:(c + 1) * embed_dim]
        if s != 1.0:
            ws = ws * s
            bs = bs * s
        w_parts.append(ws)
        b_parts.append(bs)
    return (jnp.transpose(jnp.concatenate(w_parts, axis=0)),
            jnp.concatenate(b_parts, axis=0))


def forward(params, query, key_in, shape, value, num_heads):
    tgt_len, bsz, embed_dim = query.shape
    src_len = key_in.shape[0]
    head_dim = embed_dim // num_heads
    scaling = head_dim ** (-0.5)

    cap = _vmem_capacity_bytes()
    vmem_limit = min(int(cap * 0.7), 100 * 1024 * 1024)

    W, B = params["in_proj_weight"], params["in_proj_bias"]
    # scaling folded into q / q_local weight AND bias chunks
    wq_t, bq = _gather_chunks(W, B, _Q_CHUNKS, embed_dim,
                              (scaling, 1.0, 1.0, scaling))
    wk_t, bk = _gather_chunks(W, B, _K_CHUNKS, embed_dim, (1.0, 1.0, 1.0, 1.0))
    wv_t, bv = _gather_chunks(W, B, _V_CHUNKS, embed_dim, (1.0,))

    # projections (bf16 outputs)
    qp = pallas_linear(query.reshape(-1, embed_dim), wq_t, bq, vmem_limit=vmem_limit)
    kp = pallas_linear(key_in.reshape(-1, embed_dim), wk_t, bk, vmem_limit=vmem_limit)
    vp = pallas_linear(value.reshape(-1, embed_dim), wv_t, bv, vmem_limit=vmem_limit)

    # one stacked bf16 transpose per projection (instead of 9 per-tensor passes)
    q_stack = jnp.transpose(
        qp.reshape(tgt_len, bsz, 4, num_heads, head_dim), (2, 1, 3, 0, 4))
    k_stack = jnp.transpose(
        kp.reshape(src_len, bsz, 4, num_heads, head_dim), (2, 1, 3, 0, 4))
    v_bh = jnp.transpose(
        vp.reshape(src_len, bsz, num_heads, head_dim), (1, 2, 0, 3))

    # fused [triu | triu^T] operand, bf16
    s0, s1 = shape
    triu = jnp.triu(jnp.ones((src_len, src_len), jnp.float32))
    mini = jnp.tile(jnp.triu(jnp.ones((s1, s1), jnp.float32)), (s0, s0))
    triu = triu * mini
    tri_cat = jnp.concatenate([triu, jnp.transpose(triu)], axis=1
                              ).astype(jnp.bfloat16)

    # per-generation tiling (v7x 64 MiB vs v5e/v6e 128 MiB VMEM)
    budget = int(cap * 0.45)
    tq_cap = 512 if cap >= 96 * 1024 * 1024 else 256
    tq, Hg = _choose_attn_tiling(tgt_len, num_heads, src_len, head_dim,
                                 budget, tq_cap)
    tgt_pad = _round_up(tgt_len, tq)
    if tgt_pad != tgt_len:
        q_stack = jnp.pad(q_stack,
                          ((0, 0), (0, 0), (0, 0), (0, tgt_pad - tgt_len), (0, 0)))

    args = (tri_cat, q_stack, k_stack, v_bh)
    try:
        attn_bhtd, cmask_part = _build_attention_call(
            bsz, num_heads, Hg, tgt_pad, src_len, head_dim, tq, vmem_limit,
            single_buffer=True)(*args)
    except Exception:
        # fallback if single-buffering (pipeline_mode) is rejected on this jax/TPU
        attn_bhtd, cmask_part = _build_attention_call(
            bsz, num_heads, Hg, tgt_pad, src_len, head_dim, tq, vmem_limit,
            single_buffer=False)(*args)

    if tgt_pad != tgt_len:
        attn_bhtd = attn_bhtd[:, :, :tgt_len, :]
        cmask_part = cmask_part[:, :, :tgt_len, :]

    consistent_mask = jnp.sum(cmask_part, axis=(0, 1))       # (tgt, src) f32

    # merge heads with a single bf16 transpose, then out-projection (f32 output)
    attn = jnp.transpose(attn_bhtd, (2, 0, 1, 3)).reshape(tgt_len * bsz, embed_dim)
    wo_t = jnp.transpose(params["out_proj_weight"])
    attn = pallas_linear(attn, wo_t, params["out_proj_bias"],
                         out_dtype=jnp.float32, vmem_limit=vmem_limit)
    return attn.reshape(tgt_len, bsz, embed_dim), consistent_mask


# ----------------------------------------------------------------------------
# Pure-JAX f32 reference (mirrors the PyTorch forward) for correctness check
# ----------------------------------------------------------------------------
def reference_forward(params, query, key_in, shape, value, num_heads):
    tgt_len, bsz, embed_dim = query.shape
    src_len = key_in.shape[0]
    head_dim = embed_dim // num_heads
    scaling = head_dim ** (-0.5)
    bh = bsz * num_heads
    W, B = params["in_proj_weight"], params["in_proj_bias"]

    def lin(x, s, e):
        return x @ W[s:e, :].T + B[s:e]

    E = embed_dim
    q = lin(query, 0, E) * scaling
    k = lin(key_in, E, 2 * E)
    v = lin(value, 2 * E, 3 * E)
    q_left = lin(query, 3 * E, 4 * E)
    k_left = lin(key_in, 4 * E, 5 * E)
    q_right = lin(query, 5 * E, 6 * E)
    k_right = lin(key_in, 6 * E, 7 * E)
    q_local = lin(query, 7 * E, 8 * E) * scaling
    k_local = lin(key_in, 8 * E, 9 * E)

    def to_heads(x):
        return jnp.transpose(x.reshape(x.shape[0], bh, head_dim), (1, 0, 2))

    q, k, v = to_heads(q), to_heads(k), to_heads(v)
    q_local, k_local = to_heads(q_local), to_heads(k_local)
    q_left, k_left = to_heads(q_left), to_heads(k_left)
    q_right, k_right = to_heads(q_right), to_heads(k_right)

    global_w = jnp.einsum("btd,bsd->bts", q, k)
    local_w = jnp.einsum("btd,bsd->bts", q_local, k_local)
    left_w = jnp.einsum("btd,bsd->bts", q_left, k_left)
    right_w = jnp.einsum("btd,bsd->bts", q_right, k_right)

    s0, s1 = shape
    triu = jnp.triu(jnp.ones((src_len, src_len), jnp.float32))
    mini = jnp.tile(jnp.triu(jnp.ones((s1, s1), jnp.float32)), (s0, s0))
    triu = (triu * mini)[None]
    triu_t = jnp.swapaxes(triu, 1, 2)

    left_sm = jax.nn.softmax(left_w, axis=-1)
    right_sm = jax.nn.softmax(right_w, axis=-1)
    local_mask = (left_sm @ triu) * (right_sm @ triu_t) + \
                 (left_sm @ triu_t) * (right_sm @ triu)

    attn_w = jax.nn.softmax(0.1 * global_w + local_w * local_mask, axis=-1)
    attn = jnp.einsum("bts,bsd->btd", attn_w, v)
    attn = jnp.transpose(attn, (1, 0, 2)).reshape(tgt_len, bsz, embed_dim)
    attn = attn @ params["out_proj_weight"].T + params["out_proj_bias"]
    return attn, jnp.sum(local_mask, axis=0)


# ----------------------------------------------------------------------------
if __name__ == "__main__":
    embed_dim = 32
    num_heads = 4
    tgt_len = 16
    src_len = 16
    bsz = 2
    shape = (4, 4)  # shape[0] * shape[1] == src_len

    root = jax.random.PRNGKey(0)
    kp, kq, kk, kv = jax.random.split(root, 4)
    params = init_params(kp, embed_dim)
    query = jax.random.normal(kq, (tgt_len, bsz, embed_dim), jnp.float32)
    key_in = jax.random.normal(kk, (src_len, bsz, embed_dim), jnp.float32)
    value = jax.random.normal(kv, (src_len, bsz, embed_dim), jnp.float32)

    attn, cmask = forward(params, query, key_in, shape, value, num_heads)
    attn = jax.block_until_ready(attn)
    cmask = jax.block_until_ready(cmask)

    attn_ref, cmask_ref = reference_forward(params, query, key_in, shape,
                                            value, num_heads)
    assert attn.shape == (tgt_len, bsz, embed_dim)
    assert cmask.shape == (tgt_len, src_len)
    # bf16 HBM I/O + approx-reciprocal softmax vs pure-f32 reference
    assert jnp.allclose(attn, attn_ref, atol=3e-2, rtol=3e-2)
    assert jnp.allclose(cmask, cmask_ref, atol=3e-2, rtol=3e-2)

    print("KERNEL_OK")
</pallas_src>

<mosaic_0001>
module attributes {stable_mosaic.version = 11 : i64} {
  func.func @_linear_kernel(%arg0: i32, %arg1: i32, %arg2: memref<32x32xf32, #tpu.memory_space<vmem>>, %arg3: memref<32x128xbf16, #tpu.memory_space<vmem>>, %arg4: memref<1x128xf32, #tpu.memory_space<vmem>>, %arg5: memref<32x128xbf16, #tpu.memory_space<vmem>>) attributes {dimension_semantics = [#tpu.dimension_semantics<parallel>, #tpu.dimension_semantics<parallel>], iteration_bounds = array<i64: 1, 1>, scalar_prefetch = 0 : i64, scratch_operands = 0 : i64, tpu.core_type = #tpu.core_type<tc>, window_params = [{transform_indices = @transform_0, window_bounds = array<i64: 32, 32>}, {transform_indices = @transform_1, window_bounds = array<i64: 32, 128>}, {transform_indices = @transform_2, window_bounds = array<i64: 1, 128>}, {transform_indices = @transform_3, window_bounds = array<i64: 32, 128>}]} {
    %c0 = arith.constant 0 : index
    %c0_0 = arith.constant 0 : index
    %0 = vector.load %arg2[%c0, %c0_0] : memref<32x32xf32, #tpu.memory_space<vmem>>, vector<32x32xf32>
    %1 = arith.truncf %0 : vector<32x32xf32> to vector<32x32xbf16>
    %c0_1 = arith.constant 0 : index
    %c0_2 = arith.constant 0 : index
    %2 = vector.load %arg3[%c0_1, %c0_2] : memref<32x128xbf16, #tpu.memory_space<vmem>>, vector<32x128xbf16>
    %cst = arith.constant dense<0.000000e+00> : vector<32x128xf32>
    %3 = tpu.matmul %1, %2, %cst {dimension_numbers = #tpu.dot_dimension_numbers<[1], [0], [0], [1], [0, 0, 1, 1], [], []>} : vector<32x32xbf16>, vector<32x128xbf16>, vector<32x128xf32> -> vector<32x128xf32>
    %c0_3 = arith.constant 0 : index
    %c0_4 = arith.constant 0 : index
    %4 = vector.load %arg4[%c0_3, %c0_4] : memref<1x128xf32, #tpu.memory_space<vmem>>, vector<1x128xf32>
    %5 = vector.broadcast %4 : vector<1x128xf32> to vector<32x128xf32>
    %6 = arith.addf %3, %5 : vector<32x128xf32>
    %7 = arith.truncf %6 : vector<32x128xf32> to vector<32x128xbf16>
    %c0_5 = arith.constant 0 : index
    %c0_6 = arith.constant 0 : index
    %8 = vector.load %arg5[%c0_5, %c0_6] : memref<32x128xbf16, #tpu.memory_space<vmem>>, vector<32x128xbf16>
    tpu.vector_store %arg5[%c0_5, %c0_6], %7 {strides = array<i32>} : memref<32x128xbf16, #tpu.memory_space<vmem>>, vector<32x128xbf16>,
    return
  }
  func.func @transform_0(%arg0: i32, %arg1: i32) -> (i32, i32) {
    %c0_i32 = arith.constant 0 : i32
    %c0_i32_0 = arith.constant 0 : i32
    return %arg0, %c0_i32 : i32, i32
  }
  func.func @transform_1(%arg0: i32, %arg1: i32) -> (i32, i32) {
    %c0_i32 = arith.constant 0 : i32
    %c0_i32_0 = arith.constant 0 : i32
    return %c0_i32, %arg1 : i32, i32
  }
  func.func @transform_2(%arg0: i32, %arg1: i32) -> (i32, i32) {
    %c0_i32 = arith.constant 0 : i32
    %c0_i32_0 = arith.constant 0 : i32
    return %c0_i32, %arg1 : i32, i32
  }
  func.func @transform_3(%arg0: i32, %arg1: i32) -> (i32, i32) {
    %c0_i32 = arith.constant 0 : i32
    return %arg0, %arg1 : i32, i32
  }
}

</mosaic_0001>

<bundles_post_ra>
// kernel: tpu_custom_call.1
= control target key start
LH: loop header
LB: loop body
LE: loop exit
PB: predicated region body
PF: predicated region fallthrough
CT: control target
= control target key end

     0   :  { %8 = vsyncpa [#allocation3], 0  ;;  %s323_s0 = inlined_call_operand.hbm [shape: f32[32,32], index: 0, kind: input, shape index: {}]   ;;  %s324_s1 = inlined_call_operand.hbm [shape: bf16[32,128], index: 1, kind: input, shape index: {}]   ;;  %s325_s2 = inlined_call_operand.vmem [shape: f32[1,128], index: 2, kind: input, shape index: {}]   ;;  %s326_s3 = inlined_call_operand.hbm [shape: bf16[32,128], index: 3, kind: output, shape index: {}]  }
   0x1   :  { %9 = vsyncpa [#allocation6], 0 }
   0x2   :  { %10 = vsyncpa [#allocation4], 0  ;;  %s278_s12 = smov [#allocation2]  }
   0x3   :  { %s16_s13 = sshll.u32 %s278_s12, 4  ;;  %s17_s13 = int_to_ptr.vmem [resolvable:$true] %s16_s13 }
   0x4   :  { %s220_s14 = scalar_lea.vmem %s17_s13, 512  ;;  %p225_p1 = scmp.lt.s32.totalorder %s17_s13, %s17_s13 }
   0x5   :  { %p221_p0 = scmp.ne.s32.totalorder %s17_s13, %s220_s14  ;;  %p226_p2 = scmp.lt.s32.totalorder %s220_s14, %s220_s14 }
   0x7   :  { %p227_p3 = por %p226_p2, %p225_p1 }
   0x9   :  { %p228_p4 = pnand %p227_p3, %p221_p0 }
   0xb   :  { %231 = shalt.err (!%p228_p4)
}
   0xc   :  { %s279_s15 = smov 128   ;;  %s280_s16 = smov 8  }
   0xd   :  { %22 = dma.hbm_to_vmem [thread:$0]  %s323_s0, 512, %s17_s13, [#allocation3], %s279_s15, %s279_s15, %s280_s16  }
   0xe   :  { %s281_s19 = smov [#allocation5]  }
   0xf   :  { %s28_s20 = sshll.u32 %s281_s19, 4  ;;  %s29_s20 = int_to_ptr.vmem [resolvable:$true] %s28_s20 }
  0x10   :  { %s240_s21 = scalar_lea.vmem %s29_s20, 256  ;;  %p245_p6 = scmp.lt.s32.totalorder %s29_s20, %s29_s20 }
  0x11   :  { %p241_p5 = scmp.ne.s32.totalorder %s29_s20, %s240_s21  ;;  %p246_p7 = scmp.lt.s32.totalorder %s240_s21, %s240_s21 }
  0x13   :  { %p247_p8 = por %p246_p7, %p245_p6 }
  0x15   :  { %p248_p9 = pnand %p247_p8, %p241_p5 }
  0x17   :  { %251 = shalt.err (!%p248_p9)
}
  0x18   :  { %s282_s22 = smov 64   ;;  %s283_s23 = smov 4  }
  0x19   :  { %34 = dma.hbm_to_vmem [thread:$0]  %s324_s1, 256, %s29_s20, [#allocation6], %s282_s22, %s282_s22, %s283_s23  }
  0x1a   :  { %272 = dma.done.wait [#allocation3], 512  }
  0x1b   :  { %273 = vsyncadd [#allocation3], 4294966784 }
  0x1c   :  { %274 = dma.done.wait [#allocation6], 256  }
  0x1d   :  { %275 = vsyncadd [#allocation6], 4294967040  ;;  %v210_v0 = vld [vmem:[#allocation5 + $0x8] sm:$0xff]   ;;  %v211_v1 = vld [vmem:[#allocation5] sm:$0xff]   ;;  %vm73_vm0 = vcmask 261120   ;;  %s284_s26 = smov [#allocation7]  }
  0x1e   :  { %195 = vmatprep.subr.bf16.mxu0 %v210_v0  ;;  %v44_v2 = vld [vmem:[#allocation2] sm:$0xff]  ;;  %v45_v3 = vld [vmem:[#allocation2 + $0x8] sm:$0xff]  ;;  %v46_v5 = vld [vmem:[#allocation2 + $0x10] sm:$0xff]  ;;  %s154_s27 = sshll.u32 %s284_s26, 4  ;;  %s155_s27 = int_to_ptr.vmem [resolvable:$true] %s154_s27 }
  0x1f   :  { %196 = vmatpush3.bf16.msra.mxu0 %v210_v0  ;;  %v48_v4 = vpack.c.bf16 %v45_v3, %v44_v2  ;;  %v47_v6 = vld [vmem:[#allocation2 + $0x18] sm:$0xff]  ;;  %v167_v9 = vld [vmem:[%s325_s2] ss:$0 sm:$0xff]  ;;  %s252_s28 = scalar_lea.vmem %s155_s27, 256  ;;  %p257_p11 = scmp.lt.s32.totalorder %s155_s27, %s155_s27 }
  0x20   :  { %197 = vmatprep.subr.bf16.mxu0 %v211_v1  ;;  %v49_v7 = vpack.c.bf16 %v47_v6, %v46_v5  ;;  %p253_p10 = scmp.ne.s32.totalorder %s155_s27, %s252_s28  ;;  %p258_p12 = scmp.lt.s32.totalorder %s252_s28, %s252_s28 }
  0x21   :  { %199 = vmatprep.mubr.msk.bf16.mxu0 %vm73_vm0, %v48_v4 }
  0x22   :  { %p259_p13 = por %p258_p12, %p257_p11 }
  0x23   :  { %198 = vmatpush3.bf16.msra.mxu0 %v211_v1 }
  0x24   :  { %p260_p0 = pnand %p259_p13, %p253_p10 }
  0x26   :  { %200 = vmatmul.mubr.msk.bf16.vlgmr.msra.gmra.mxu0 %vm73_vm0, %v49_v7 }
  0xe6   :  { %v201_v8 = vpop.f32.mrf.mxu0 }
  0xe7   :  { %v123_v12 = vadd.f32 %v201_v8, %v167_v9 }
  0xe8   :  { %v114_v10 = vpop.f32.mrf.mxu0 }
  0xe9   :  { %v115_v15 = vadd.f32 %v167_v9, %v114_v10 }
  0xea   :  { %v202_v11 = vpop.f32.mrf.mxu0 }
  0xeb   :  { %v126_v13 = vadd.f32 %v202_v11, %v167_v9 }
  0xec   :  { %v117_v14 = vpop.f32.mrf.mxu0 }
  0xed   :  { %v188_v16 = vpack.c.bf16 %v126_v13, %v123_v12  ;;  %v118_v17 = vadd.f32 %v167_v9, %v117_v14 }
  0xef   :  { %190 = vst [vmem:[#allocation7 + $0x8] sm:$0xff] %v188_v16   ;;  %v183_v18 = vpack.c.bf16 %v118_v17, %v115_v15 }
  0xf1   :  { %184 = vst [vmem:[#allocation7] sm:$0xff] %v183_v18  }
  0xf2   :  { %263 = shalt.err (!%p260_p0)
}
  0xf3   :  { %160 = dma.vmem_to_hbm [thread:$0]  %s155_s27, 256, %s326_s3, [#allocation4], %s282_s22, %s282_s22, %s283_s23  }
  0xf4   :  { %276 = dma.done.wait [#allocation4], 256  }
  0xf5   :  { %277 = vsyncadd [#allocation4], 4294967040 }
  0xf6   :  { %164 = vsyncpa [#allocation3], 1 }
  0xf7   :  { %165 = vsyncpa [#allocation6], 1 }
  0xf8   :  { %166 = vsyncpa [#allocation4], 1 }

</bundles_post_ra>
